<compile_context>
chip_gen: v7x
topology: tpu7x:2x2x1
jax: 0.10.0
libtpu: 0.0.40
codegen_flags: <defaults>
</compile_context>

<pallas_src>
import math
from functools import partial

import jax
import jax.numpy as jnp
from jax import lax
from jax.experimental import pallas as pl
from jax.experimental.pallas import tpu as pltpu

LANE = 128
# Elements per input per grid step: 1 MiB f32 / 512 KiB bf16 per pipeline
# buffer; 2 inputs x 2 buffers ~= 4 MiB VMEM -> safe on v5e/v6e/v7x defaults.
TARGET_ELEMS = 256 * 1024


def _sublanes_for(*dtypes):
    """Dtype-native sublane count: 8 for 4-byte, 16 for 2-byte, 32 for 1-byte."""
    itemsize = min(jnp.dtype(d).itemsize for d in dtypes)
    return max(8, min(32, 32 // itemsize))


def _largest_divisor_leq(n, cap):
    best = 1
    for d in range(1, min(n, cap) + 1):
        if n % d == 0:
            best = d
    return best


def _pick_k_block(row, lo, gsize, target):
    """Groups (of `gsize` elements) streamed per grid step (static Python).

    Preference order:
      1. divisor of both the per-row group count and the bg offset in groups
         -> chunks end exactly at the row end AND start exactly at the first
            kept element: no padding, no masking at all;
      2. divisor of the per-row group count -> no padding; only the first
         chunk needs a cheap head mask (it overlaps < 1 chunk of bg data);
      3. otherwise the raw target size; the wrapper zero-pads the row tail
         (awkward flat sizes only; zero padding is sum-neutral).
    Candidates are accepted only if >= half the target span, so the per-step
    payload never collapses to tiny blocks (the old exact-divisor cliff).
    """
    row_groups = -(-row // gsize)
    span = max(1, min(target, row_groups))
    thresh = max(1, span // 2)
    if row % gsize == 0:
        if lo > 0 and lo % gsize == 0:
            d = _largest_divisor_leq(math.gcd(row_groups, lo // gsize), target)
            if d >= thresh:
                return d
        d = _largest_divisor_leq(row_groups, target)
        if d >= thresh:
            return d
    return span


def _make_dice_kernel(*, k_block, sub, lane, blk0, s_inner, n_chunks, lo, hi,
                      head, dead):
    """Accumulates sum(yt*yp) and sum(yt+yp) of one chunk into the f32 output
    blocks, which stay VMEM-resident across the innermost grid axis."""
    gsize = sub * lane
    chunk_elems = k_block * gsize

    def kernel(yt_ref, yp_ref, top_ref, bot_ref):
        s = pl.program_id(2)

        @pl.when(s == 0)
        def _init():
            top_ref[0, 0] = jnp.zeros((sub, lane), jnp.float32)
            bot_ref[0, 0] = jnp.zeros((sub, lane), jnp.float32)

        # (k_block, sub, lane) tile; stream in native dtype, upcast in-kernel.
        yt = yt_ref[0].astype(jnp.float32)
        yp = yp_ref[0].astype(jnp.float32)

        def accumulate(a, b):
            top_ref[0, 0] += jnp.sum(a * b, axis=0)
            bot_ref[0, 0] += jnp.sum(a + b, axis=0)

        if not (head or dead):
            accumulate(yt, yp)
            return

        chunk = pl.program_id(1) * s_inner + s
        conds = []
        if head:                      # first chunk may overlap bg-channel data
            conds.append(chunk == 0)
        if dead:                      # grid steps beyond the last real chunk
            conds.append(chunk >= n_chunks)
        edge = conds[0]
        for c in conds[1:]:
            edge = jnp.logical_or(edge, c)

        @pl.when(jnp.logical_not(edge))
        def _interior():              # steady state: zero masking work
            accumulate(yt, yp)

        @pl.when(edge)
        def _edge():
            shape = (k_block, sub, lane)
            # Flat element index within the batch row (int32 is fine for any
            # realistic segmentation volume; > 2**31 elems per row unsupported).
            base = (blk0 + chunk) * chunk_elems
            idx = (base
                   + lax.broadcasted_iota(jnp.int32, shape, 0) * gsize
                   + lax.broadcasted_iota(jnp.int32, shape, 1) * lane
                   + lax.broadcasted_iota(jnp.int32, shape, 2))
            valid = jnp.logical_and(idx >= lo, idx < hi)
            accumulate(jnp.where(valid, yt, 0.0), jnp.where(valid, yp, 0.0))

    return kernel


def _dice_partial_sums(yt4, yp4, *, lo, hi, k_block, blk0, n_chunks):
    """Per-(batch, parallel-chunk) partial sums of yt*yp and yt+yp.

    yt4/yp4: (B, Gtot, SUB, 128) free views of the raw NC... tensors.
    Returns two (B, P, SUB, 128) float32 arrays.
    """
    B, gtot, sub, lane = yt4.shape
    gsize = sub * lane
    chunk_elems = k_block * gsize
    assert (blk0 + n_chunks) * k_block <= gtot  # no out-of-bounds blocks, ever

    # v7x has 2 TensorCores: if there is no batch parallelism, split the
    # streaming axis into P=2 independent partial sums.  (No-op on v5e/v6e.)
    P = 1 if B >= 2 else min(2, n_chunks)
    s_inner = -(-n_chunks // P)
    dead = P * s_inner > n_chunks            # at most P-1 padded grid steps
    head = blk0 * chunk_elems < lo           # first chunk overlaps bg data

    kernel = _make_dice_kernel(k_block=k_block, sub=sub, lane=lane, blk0=blk0,
                               s_inner=s_inner, n_chunks=n_chunks, lo=lo, hi=hi,
                               head=head, dead=dead)

    if dead:
        def in_map(b, p, s):
            # Clamp padded steps onto the last real chunk so the DMA stays in
            # bounds; the kernel fully masks their contribution.
            return (b, blk0 + jnp.minimum(p * s_inner + s, n_chunks - 1), 0, 0)
    else:
        def in_map(b, p, s):
            return (b, blk0 + p * s_inner + s, 0, 0)

    in_spec = pl.BlockSpec((1, k_block, sub, lane), in_map)
    out_spec = pl.BlockSpec((1, 1, sub, lane), lambda b, p, s: (b, p, 0, 0))
    out_shape = jax.ShapeDtypeStruct((B, P, sub, lane), jnp.float32)

    kept = B * (hi - lo)
    cost = pl.CostEstimate(
        flops=3 * kept,
        transcendentals=0,
        bytes_accessed=kept * (jnp.dtype(yt4.dtype).itemsize
                               + jnp.dtype(yp4.dtype).itemsize)
        + 2 * B * P * sub * lane * 4,
    )

    return pl.pallas_call(
        kernel,
        out_shape=(out_shape, out_shape),
        grid_spec=pltpu.PrefetchScalarGridSpec(
            num_scalar_prefetch=0,
            grid=(B, P, s_inner),
            in_specs=[in_spec, in_spec],
            out_specs=[out_spec, out_spec],
        ),
        compiler_params=pltpu.CompilerParams(
            dimension_semantics=("parallel", "parallel", "arbitrary")),
        cost_estimate=cost,
    )(yt4, yp4)


@partial(jax.jit, static_argnums=(2,))
def dice_loss(y_pred, y_true, bg):
    """Matches torch `Dice(bg).forward(y_pred, y_true)` for N-D NC... inputs."""
    if y_pred.shape != y_true.shape:
        raise ValueError("y_pred / y_true shape mismatch")
    B, C = int(y_true.shape[0]), int(y_true.shape[1])
    dhw = 1
    for d in y_true.shape[2:]:
        dhw *= int(d)
    if C - bg <= 0 or dhw == 0 or B == 0:
        # Empty kept slice: top = 0, bottom = clamp(0, 1e-5) -> dice = 1.
        return jnp.float32(1.0)

    sub = _sublanes_for(y_true.dtype, y_pred.dtype)
    gsize = sub * LANE
    row = C * dhw                 # contiguous elements per batch
    lo = bg * dhw                 # first kept element within each batch row
    hi = row                      # kept channels run to the end of the row

    target = max(1, TARGET_ELEMS // gsize)
    k_block = _pick_k_block(row, lo, gsize, target)
    chunk_elems = k_block * gsize
    blk0 = lo // chunk_elems
    n_chunks = -(-(hi - blk0 * chunk_elems) // chunk_elems)
    row_len = (blk0 + n_chunks) * chunk_elems   # >= row, multiple of gsize

    def to_rows(x):
        x2 = x.reshape(B, row)                  # free: contiguous dims merged
        if row_len != row:
            # TODO(synk): one materializing zero-pad copy; only hit when the
            # flat per-batch length has no friendly factorization.  Zero
            # padding is sum-neutral for both reductions.
            x2 = jnp.pad(x2, ((0, 0), (0, row_len - row)))
        return x2.reshape(B, row_len // gsize, sub, LANE)

    top_p, bot_p = _dice_partial_sums(
        to_rows(y_true), to_rows(y_pred),
        lo=lo, hi=hi, k_block=k_block, blk0=blk0, n_chunks=n_chunks)

    # Tiny cross-lane reduction + scalar epilogue in plain JAX.
    top = 2.0 * jnp.sum(top_p)
    bottom = jnp.maximum(jnp.sum(bot_p), jnp.float32(1e-5))
    return (1.0 - top / bottom).astype(jnp.float32)


def _reference_dice(y_pred, y_true, bg):
    yt = y_true[:, bg:].astype(jnp.float32)
    yp = y_pred[:, bg:].astype(jnp.float32)
    top = 2.0 * jnp.sum(yt * yp)
    bottom = jnp.maximum(jnp.sum(yt + yp), jnp.float32(1e-5))
    return 1.0 - top / bottom


if __name__ == "__main__":
    key = jax.random.PRNGKey(0)

    cases = [
        # shape, dtype, bg
        ((2, 4, 16, 16, 16), jnp.float32, 1),   # small NCDHW, B>=2, head-masked chunk
        ((1, 4, 32, 64, 64), jnp.float32, 1),   # B=1 -> P=2 split (v7x) + dead-step mask
        ((1, 2, 7, 9, 11), jnp.bfloat16, 1),    # awkward size -> padded row, bf16 SUB=16
    ]

    for i, (shape, dtype, bg) in enumerate(cases):
        key, k1, k2 = jax.random.split(key, 3)
        y_pred = jax.random.uniform(k1, shape, jnp.float32).astype(dtype)
        y_true = jax.random.uniform(k2, shape, jnp.float32).astype(dtype)

        got = jax.block_until_ready(dice_loss(y_pred, y_true, bg))
        want = _reference_dice(y_pred, y_true, bg)
        assert jnp.allclose(got, want, rtol=1e-5, atol=1e-5), (i, got, want)

    print("KERNEL_OK")
</pallas_src>

<mosaic_0001>
module attributes {stable_mosaic.version = 11 : i64} {
  func.func @kernel(%arg0: i32, %arg1: i32, %arg2: i32, %arg3: memref<1x16x8x128xf32, #tpu.memory_space<vmem>>, %arg4: memref<1x16x8x128xf32, #tpu.memory_space<vmem>>, %arg5: memref<1x1x8x128xf32, #tpu.memory_space<vmem>>, %arg6: memref<1x1x8x128xf32, #tpu.memory_space<vmem>>) attributes {dimension_semantics = [#tpu.dimension_semantics<parallel>, #tpu.dimension_semantics<parallel>, #tpu.dimension_semantics<arbitrary>], iteration_bounds = array<i64: 2, 1, 1>, scalar_prefetch = 0 : i64, scratch_operands = 0 : i64, tpu.core_type = #tpu.core_type<tc>, window_params = [{transform_indices = @transform_0, window_bounds = array<i64: 1, 16, 8, 128>}, {transform_indices = @transform_1, window_bounds = array<i64: 1, 16, 8, 128>}, {transform_indices = @transform_2, window_bounds = array<i64: 1, 1, 8, 128>}, {transform_indices = @transform_3, window_bounds = array<i64: 1, 1, 8, 128>}]} {
    %c0_i32 = arith.constant 0 : i32
    %0 = arith.cmpi eq, %arg2, %c0_i32 : i32
    %1 = arith.extui %0 : i1 to i32
    %c0_i32_0 = arith.constant 0 : i32
    %2 = arith.cmpi ne, %1, %c0_i32_0 : i32
    scf.if %2 {
      %cst = arith.constant 0.000000e+00 : f32
      %15 = vector.broadcast %cst : f32 to vector<8x128xf32>
      %c0_11 = arith.constant 0 : index
      %c0_12 = arith.constant 0 : index
      %c0_13 = arith.constant 0 : index
      %c0_14 = arith.constant 0 : index
      %16 = vector.load %arg5[%c0_11, %c0_12, %c0_13, %c0_14] : memref<1x1x8x128xf32, #tpu.memory_space<vmem>>, vector<1x1x8x128xf32>
      %17 = vector.shape_cast %16 : vector<1x1x8x128xf32> to vector<8x128xf32>
      %18 = vector.shape_cast %15 : vector<8x128xf32> to vector<1x1x8x128xf32>
      tpu.vector_store %arg5[%c0_11, %c0_12, %c0_13, %c0_14], %18 {strides = array<i32>} : memref<1x1x8x128xf32, #tpu.memory_space<vmem>>, vector<1x1x8x128xf32>,
      %cst_15 = arith.constant 0.000000e+00 : f32
      %19 = vector.broadcast %cst_15 : f32 to vector<8x128xf32>
      %c0_16 = arith.constant 0 : index
      %c0_17 = arith.constant 0 : index
      %c0_18 = arith.constant 0 : index
      %c0_19 = arith.constant 0 : index
      %20 = vector.load %arg6[%c0_16, %c0_17, %c0_18, %c0_19] : memref<1x1x8x128xf32, #tpu.memory_space<vmem>>, vector<1x1x8x128xf32>
      %21 = vector.shape_cast %20 : vector<1x1x8x128xf32> to vector<8x128xf32>
      %22 = vector.shape_cast %19 : vector<8x128xf32> to vector<1x1x8x128xf32>
      tpu.vector_store %arg6[%c0_16, %c0_17, %c0_18, %c0_19], %22 {strides = array<i32>} : memref<1x1x8x128xf32, #tpu.memory_space<vmem>>, vector<1x1x8x128xf32>,
    } else {
    }
    %c0 = arith.constant 0 : index
    %c0_1 = arith.constant 0 : index
    %c0_2 = arith.constant 0 : index
    %c0_3 = arith.constant 0 : index
    %3 = vector.load %arg3[%c0, %c0_1, %c0_2, %c0_3] : memref<1x16x8x128xf32, #tpu.memory_space<vmem>>, vector<1x16x8x128xf32>
    %4 = vector.shape_cast %3 : vector<1x16x8x128xf32> to vector<16x8x128xf32>
    %c0_4 = arith.constant 0 : index
    %c0_5 = arith.constant 0 : index
    %c0_6 = arith.constant 0 : index
    %c0_7 = arith.constant 0 : index
    %5 = vector.load %arg4[%c0_4, %c0_5, %c0_6, %c0_7] : memref<1x16x8x128xf32, #tpu.memory_space<vmem>>, vector<1x16x8x128xf32>
    %6 = vector.shape_cast %5 : vector<1x16x8x128xf32> to vector<16x8x128xf32>
    %c1_i32 = arith.constant 1 : i32
    %7 = arith.muli %arg1, %c1_i32 : i32
    %8 = arith.addi %7, %arg2 : i32
    %c0_i32_8 = arith.constant 0 : i32
    %9 = arith.cmpi eq, %8, %c0_i32_8 : i32
    %true = arith.constant true
    %10 = arith.xori %9, %true : i1
    %11 = arith.extui %10 : i1 to i32
    %c0_i32_9 = arith.constant 0 : i32
    %12 = arith.cmpi ne, %11, %c0_i32_9 : i32
    scf.if %12 {
      %c0_11 = arith.constant 0 : index
      %c0_12 = arith.constant 0 : index
      %c0_13 = arith.constant 0 : index
      %c0_14 = arith.constant 0 : index
      %15 = vector.load %arg5[%c0_11, %c0_12, %c0_13, %c0_14] : memref<1x1x8x128xf32, #tpu.memory_space<vmem>>, vector<1x1x8x128xf32>
      %16 = vector.shape_cast %15 : vector<1x1x8x128xf32> to vector<8x128xf32>
      %17 = arith.mulf %4, %6 : vector<16x8x128xf32>
      %cst = arith.constant dense<0.000000e+00> : vector<8x128xf32>
      %18 = vector.multi_reduction <add>, %17, %cst [0] : vector<16x8x128xf32> to vector<8x128xf32>
      %19 = arith.addf %16, %18 : vector<8x128xf32>
      %c0_15 = arith.constant 0 : index
      %c0_16 = arith.constant 0 : index
      %c0_17 = arith.constant 0 : index
      %c0_18 = arith.constant 0 : index
      %20 = vector.load %arg5[%c0_15, %c0_16, %c0_17, %c0_18] : memref<1x1x8x128xf32, #tpu.memory_space<vmem>>, vector<1x1x8x128xf32>
      %21 = vector.shape_cast %20 : vector<1x1x8x128xf32> to vector<8x128xf32>
      %22 = vector.shape_cast %19 : vector<8x128xf32> to vector<1x1x8x128xf32>
      tpu.vector_store %arg5[%c0_15, %c0_16, %c0_17, %c0_18], %22 {strides = array<i32>} : memref<1x1x8x128xf32, #tpu.memory_space<vmem>>, vector<1x1x8x128xf32>,
      %c0_19 = arith.constant 0 : index
      %c0_20 = arith.constant 0 : index
      %c0_21 = arith.constant 0 : index
      %c0_22 = arith.constant 0 : index
      %23 = vector.load %arg6[%c0_19, %c0_20, %c0_21, %c0_22] : memref<1x1x8x128xf32, #tpu.memory_space<vmem>>, vector<1x1x8x128xf32>
      %24 = vector.shape_cast %23 : vector<1x1x8x128xf32> to vector<8x128xf32>
      %25 = arith.addf %4, %6 : vector<16x8x128xf32>
      %cst_23 = arith.constant dense<0.000000e+00> : vector<8x128xf32>
      %26 = vector.multi_reduction <add>, %25, %cst_23 [0] : vector<16x8x128xf32> to vector<8x128xf32>
      %27 = arith.addf %24, %26 : vector<8x128xf32>
      %c0_24 = arith.constant 0 : index
      %c0_25 = arith.constant 0 : index
      %c0_26 = arith.constant 0 : index
      %c0_27 = arith.constant 0 : index
      %28 = vector.load %arg6[%c0_24, %c0_25, %c0_26, %c0_27] : memref<1x1x8x128xf32, #tpu.memory_space<vmem>>, vector<1x1x8x128xf32>
      %29 = vector.shape_cast %28 : vector<1x1x8x128xf32> to vector<8x128xf32>
      %30 = vector.shape_cast %27 : vector<8x128xf32> to vector<1x1x8x128xf32>
      tpu.vector_store %arg6[%c0_24, %c0_25, %c0_26, %c0_27], %30 {strides = array<i32>} : memref<1x1x8x128xf32, #tpu.memory_space<vmem>>, vector<1x1x8x128xf32>,
    } else {
    }
    %13 = arith.extui %9 : i1 to i32
    %c0_i32_10 = arith.constant 0 : i32
    %14 = arith.cmpi ne, %13, %c0_i32_10 : i32
    scf.if %14 {
      %c0_i32_11 = arith.constant 0 : i32
      %15 = arith.addi %c0_i32_11, %8 : i32
      %c16384_i32 = arith.constant 16384 : i32
      %16 = arith.muli %15, %c16384_i32 : i32
      %17 = tpu.iota {dimensions = array<i32: 0>} : vector<16x8x128xi32>
      %c1024_i32 = arith.constant 1024 : i32
      %18 = vector.broadcast %c1024_i32 : i32 to vector<16x8x128xi32>
      %19 = arith.muli %17, %18 : vector<16x8x128xi32>
      %20 = vector.broadcast %16 : i32 to vector<16x8x128xi32>
      %21 = arith.addi %20, %19 : vector<16x8x128xi32>
      %22 = tpu.iota {dimensions = array<i32: 1>} : vector<16x8x128xi32>
      %c128_i32 = arith.constant 128 : i32
      %23 = vector.broadcast %c128_i32 : i32 to vector<16x8x128xi32>
      %24 = arith.muli %22, %23 : vector<16x8x128xi32>
      %25 = arith.addi %21, %24 : vector<16x8x128xi32>
      %26 = tpu.iota {dimensions = array<i32: 2>} : vector<16x8x128xi32>
      %27 = arith.addi %25, %26 : vector<16x8x128xi32>
      %c4096_i32 = arith.constant 4096 : i32
      %28 = vector.broadcast %c4096_i32 : i32 to vector<16x8x128xi32>
      %29 = arith.cmpi sge, %27, %28 : vector<16x8x128xi32>
      %c16384_i32_12 = arith.constant 16384 : i32
      %30 = vector.broadcast %c16384_i32_12 : i32 to vector<16x8x128xi32>
      %31 = arith.cmpi slt, %27, %30 : vector<16x8x128xi32>
      %32 = arith.andi %29, %31 : vector<16x8x128xi1>
      %cst = arith.constant 0.000000e+00 : f32
      %33 = vector.broadcast %cst : f32 to vector<16x8x128xf32>
      %34 = arith.select %32, %4, %33 : vector<16x8x128xi1>, vector<16x8x128xf32>
      %cst_13 = arith.constant 0.000000e+00 : f32
      %35 = vector.broadcast %cst_13 : f32 to vector<16x8x128xf32>
      %36 = arith.select %32, %6, %35 : vector<16x8x128xi1>, vector<16x8x128xf32>
      %c0_14 = arith.constant 0 : index
      %c0_15 = arith.constant 0 : index
      %c0_16 = arith.constant 0 : index
      %c0_17 = arith.constant 0 : index
      %37 = vector.load %arg5[%c0_14, %c0_15, %c0_16, %c0_17] : memref<1x1x8x128xf32, #tpu.memory_space<vmem>>, vector<1x1x8x128xf32>
      %38 = vector.shape_cast %37 : vector<1x1x8x128xf32> to vector<8x128xf32>
      %39 = arith.mulf %34, %36 : vector<16x8x128xf32>
      %cst_18 = arith.constant dense<0.000000e+00> : vector<8x128xf32>
      %40 = vector.multi_reduction <add>, %39, %cst_18 [0] : vector<16x8x128xf32> to vector<8x128xf32>
      %41 = arith.addf %38, %40 : vector<8x128xf32>
      %c0_19 = arith.constant 0 : index
      %c0_20 = arith.constant 0 : index
      %c0_21 = arith.constant 0 : index
      %c0_22 = arith.constant 0 : index
      %42 = vector.load %arg5[%c0_19, %c0_20, %c0_21, %c0_22] : memref<1x1x8x128xf32, #tpu.memory_space<vmem>>, vector<1x1x8x128xf32>
      %43 = vector.shape_cast %42 : vector<1x1x8x128xf32> to vector<8x128xf32>
      %44 = vector.shape_cast %41 : vector<8x128xf32> to vector<1x1x8x128xf32>
      tpu.vector_store %arg5[%c0_19, %c0_20, %c0_21, %c0_22], %44 {strides = array<i32>} : memref<1x1x8x128xf32, #tpu.memory_space<vmem>>, vector<1x1x8x128xf32>,
      %c0_23 = arith.constant 0 : index
      %c0_24 = arith.constant 0 : index
      %c0_25 = arith.constant 0 : index
      %c0_26 = arith.constant 0 : index
      %45 = vector.load %arg6[%c0_23, %c0_24, %c0_25, %c0_26] : memref<1x1x8x128xf32, #tpu.memory_space<vmem>>, vector<1x1x8x128xf32>
      %46 = vector.shape_cast %45 : vector<1x1x8x128xf32> to vector<8x128xf32>
      %47 = arith.addf %34, %36 : vector<16x8x128xf32>
      %cst_27 = arith.constant dense<0.000000e+00> : vector<8x128xf32>
      %48 = vector.multi_reduction <add>, %47, %cst_27 [0] : vector<16x8x128xf32> to vector<8x128xf32>
      %49 = arith.addf %46, %48 : vector<8x128xf32>
      %c0_28 = arith.constant 0 : index
      %c0_29 = arith.constant 0 : index
      %c0_30 = arith.constant 0 : index
      %c0_31 = arith.constant 0 : index
      %50 = vector.load %arg6[%c0_28, %c0_29, %c0_30, %c0_31] : memref<1x1x8x128xf32, #tpu.memory_space<vmem>>, vector<1x1x8x128xf32>
      %51 = vector.shape_cast %50 : vector<1x1x8x128xf32> to vector<8x128xf32>
      %52 = vector.shape_cast %49 : vector<8x128xf32> to vector<1x1x8x128xf32>
      tpu.vector_store %arg6[%c0_28, %c0_29, %c0_30, %c0_31], %52 {strides = array<i32>} : memref<1x1x8x128xf32, #tpu.memory_space<vmem>>, vector<1x1x8x128xf32>,
    } else {
    }
    return
  }
  func.func @transform_0(%arg0: i32, %arg1: i32, %arg2: i32) -> (i32, i32, i32, i32) {
    %c1_i32 = arith.constant 1 : i32
    %0 = arith.muli %arg1, %c1_i32 : i32
    %c0_i32 = arith.constant 0 : i32
    %1 = arith.addi %c0_i32, %0 : i32
    %2 = arith.addi %1, %arg2 : i32
    %c0_i32_0 = arith.constant 0 : i32
    %c0_i32_1 = arith.constant 0 : i32
    %c0_i32_2 = arith.constant 0 : i32
    return %arg0, %2, %c0_i32_0, %c0_i32_1 : i32, i32, i32, i32
  }
  func.func @transform_1(%arg0: i32, %arg1: i32, %arg2: i32) -> (i32, i32, i32, i32) {
    %c1_i32 = arith.constant 1 : i32
    %0 = arith.muli %arg1, %c1_i32 : i32
    %c0_i32 = arith.constant 0 : i32
    %1 = arith.addi %c0_i32, %0 : i32
    %2 = arith.addi %1, %arg2 : i32
    %c0_i32_0 = arith.constant 0 : i32
    %c0_i32_1 = arith.constant 0 : i32
    %c0_i32_2 = arith.constant 0 : i32
    return %arg0, %2, %c0_i32_0, %c0_i32_1 : i32, i32, i32, i32
  }
  func.func @transform_2(%arg0: i32, %arg1: i32, %arg2: i32) -> (i32, i32, i32, i32) {
    %c0_i32 = arith.constant 0 : i32
    %c0_i32_0 = arith.constant 0 : i32
    %c0_i32_1 = arith.constant 0 : i32
    return %arg0, %arg1, %c0_i32, %c0_i32_0 : i32, i32, i32, i32
  }
  func.func @transform_3(%arg0: i32, %arg1: i32, %arg2: i32) -> (i32, i32, i32, i32) {
    %c0_i32 = arith.constant 0 : i32
    %c0_i32_0 = arith.constant 0 : i32
    %c0_i32_1 = arith.constant 0 : i32
    return %arg0, %arg1, %c0_i32, %c0_i32_0 : i32, i32, i32, i32
  }
}

</mosaic_0001>

<bundles_post_ra>
// kernel: dice_loss.1
= control target key start
LH: loop header
LB: loop body
LE: loop exit
PB: predicated region body
PF: predicated region fallthrough
CT: control target
= control target key end

     0   :  { %s821_s12 = smov 0   ;;  %s823_s13 = smov 0   ;;  %s1106_s0 = inlined_call_operand.vmem [shape: f32[2,16,8,128], index: 0, kind: input, shape index: {}]   ;;  %s1107_s1 = inlined_call_operand.vmem [shape: f32[2,16,8,128], index: 1, kind: input, shape index: {}]   ;;  %s1108_s2 = inlined_call_operand.vmem [shape: f32[2,1,8,128], index: 2, kind: output, shape index: {0}]   ;;  %s1109_s3 = inlined_call_operand.vmem [shape: f32[2,1,8,128], index: 3, kind: output, shape index: {1}]  }
   0x1   :  { %s825_s14 = smov 0  }
   0x2 LB: > { %s33_s15 = sadd.s32 1, %s795_s13  ;;  %p741_p0 = scmp.ge.s32.totalorder %s799_s14, 1  ;;  %s799_s14 = sphi %s825_s14, %s14_s14   ;;  %s795_s13 = sphi %s823_s13, %s1127_s13   ;;  %s791_s12 = sphi %s821_s12, %s1126_s12  }
   0x3   : > { %p35_p1 = scmp.ge.s32.totalorder %s33_s15, 2  ;;  %p195_p2 = scmp.lt.s32.totalorder %s799_s14, 3 }
   0x5   : > { %s1129_s15 = smov (%p35_p1, %s33_s15), 0  ;;  %p196_p3 = pnand %p741_p0, %p195_p2 }
   0x6   : > { %v413_v0 = vlaneseq (!%p196_p3)  ;;  %p245_p4 = scmp.lt.s32.totalorder (!%p196_p3), %s791_s12, 1 }
   0x7   : > { %199 = sbr.rel (%p196_p3) target bundleno = 68 (0x44), region = 28 }
   0x8   : > { %v414_v1 = vshrl.u32 (!%p196_p3), %v413_v0, 7  ;;  %v841_v3 = vand.u32 (!%p196_p3), 127, %v413_v0 }
   0xa   : > { %v839_v2 = vmul.u32 (!%p196_p3), 128, %v414_v1 }
   0xc   : > { %v417_v4 = vadd.s32 (!%p196_p3), 1024, %v839_v2  ;;  %v418_v5 = vadd.s32 (!%p196_p3), 2048, %v839_v2  ;;  %v419_v6 = vadd.s32 (!%p196_p3), 3072, %v839_v2  ;;  %v434_v7 = vadd.s32 (!%p196_p3), %v841_v3, %v839_v2 }
   0xd   : > { %v420_v9 = vadd.s32 (!%p196_p3), 4096, %v839_v2  ;;  %v421_v11 = vadd.s32 (!%p196_p3), 5120, %v839_v2  ;;  %v422_v13 = vadd.s32 (!%p196_p3), 6144, %v839_v2  ;;  %v423_v17 = vadd.s32 (!%p196_p3), 7168, %v839_v2 }
   0xe   : > { %s1131_s12 = smov (!%p245_p4, %s791_s12), 1  ;;  %v435_v8 = vadd.s32 %v841_v3, %v417_v4  ;;  %v436_v10 = vadd.s32 %v841_v3, %v418_v5  ;;  %v437_v12 = vadd.s32 %v841_v3, %v419_v6  ;;  %vm450_vm0 = vcmp.ge.s32.totalorder %v434_v7, 4096 }
   0xf   : > { %s750_s16 = sshll.u32 %s1131_s12, 7  ;;  %v438_v14 = vadd.s32 %v841_v3, %v420_v9  ;;  %vm466_vm3 = vcmp.lt.s32.totalorder %v434_v7, 16384  ;;  %v439_v21 = vadd.s32 %v841_v3, %v421_v11  ;;  %v424_v25 = vadd.s32 8192, %v839_v2  ;;  %s746_s23 = sshll.u32 %s1131_s12, 3 }
  0x10   : > { %s857_s19 = scalar_lea.vmem %s1106_s0, %s750_s16  ;;  %s864_s22 = scalar_lea.vmem %s1107_s1, %s750_s16  ;;  %vm451_vm1 = vcmp.ge.s32.totalorder %v435_v8, 4096  ;;  %vm452_vm2 = vcmp.ge.s32.totalorder %v436_v10, 4096  ;;  %vm467_vm4 = vcmp.lt.s32.totalorder %v435_v8, 16384  ;;  %vm468_vm5 = vcmp.lt.s32.totalorder %v436_v10, 16384  ;;  %vm871_vm6 = vmand %vm450_vm0, %vm466_vm3 }
  0x11   : > { %v287_v15 = vld [vmem:[%s857_s19] sm:$0xff]  ;;  %v288_v16 = vld [vmem:[%s857_s19 + $0x8] sm:$0xff]  ;;  %vm453_vm7 = vcmp.ge.s32.totalorder %v437_v12, 4096  ;;  %vm469_vm8 = vcmp.lt.s32.totalorder %v437_v12, 16384  ;;  %vm879_vm9 = vmand %vm451_vm1, %vm467_vm4  ;;  %v425_v26 = vadd.s32 9216, %v839_v2  ;;  %v426_v27 = vadd.s32 10240, %v839_v2  ;;  %s273_s26 = scalar_lea.vmem %s1108_s2, %s746_s23  ;;  %s280_s29 = scalar_lea.vmem %s1109_s3, %s746_s23 }
  0x12   : > { %v303_v19 = vld [vmem:[%s864_s22] sm:$0xff]  ;;  %v304_v20 = vld [vmem:[%s864_s22 + $0x8] sm:$0xff]  ;;  %v289_v23 = vld [vmem:[%s857_s19 + $0x10] sm:$0xff]  ;;  %v440_v28 = vadd.s32 %v841_v3, %v422_v13  ;;  %vm454_vm11 = vcmp.ge.s32.totalorder %v438_v14, 4096  ;;  %vm470_vm12 = vcmp.lt.s32.totalorder %v438_v14, 16384  ;;  %v892_v29 = vsel %vm871_vm6, %v287_v15, 0.0 }
  0x13   : > { %v305_v24 = vld [vmem:[%s864_s22 + $0x10] sm:$0xff]  ;;  %vm484_vm10 = vmand %vm452_vm2, %vm468_vm5  ;;  %v896_v30 = vsel %vm879_vm9, %v288_v16, 0.0  ;;  %v290_v31 = vld [vmem:[%s857_s19 + $0x18] sm:$0xff]  ;;  %v427_v33 = vadd.s32 11264, %v839_v2  ;;  %v441_v34 = vadd.s32 %v841_v3, %v423_v17  ;;  %v910_v36 = vsel %vm871_vm6, %v303_v19, 0.0 }
  0x14   : > { %v306_v32 = vld [vmem:[%s864_s22 + $0x18] sm:$0xff]  ;;  %vm904_vm13 = vmand %vm453_vm7, %vm469_vm8  ;;  %v914_v37 = vsel %vm879_vm9, %v304_v20, 0.0  ;;  %vm455_vm14 = vcmp.ge.s32.totalorder %v439_v21, 4096  ;;  %vm471_vm15 = vcmp.lt.s32.totalorder %v439_v21, 16384  ;;  %v916_v38 = vsel %vm484_vm10, %v289_v23, 0.0  ;;  %v291_v40 = vld [vmem:[%s857_s19 + $0x20] sm:$0xff] }
  0x15   : > { %v918_v39 = vsel %vm484_vm10, %v305_v24, 0.0  ;;  %v307_v41 = vld [vmem:[%s864_s22 + $0x20] sm:$0xff]  ;;  %v428_v42 = vadd.s32 12288, %v839_v2  ;;  %v442_v43 = vadd.s32 %v841_v3, %v424_v25  ;;  %vm926_vm0 = vmand %vm454_vm11, %vm470_vm12  ;;  %v531_v45 = vmul.f32 %v910_v36, %v892_v29  ;;  %v292_v49 = vld [vmem:[%s857_s19 + $0x28] sm:$0xff] }
  0x16   : > { %v532_v46 = vmul.f32 %v914_v37, %v896_v30  ;;  %vm456_vm1 = vcmp.ge.s32.totalorder %v440_v28, 4096  ;;  %vm472_vm2 = vcmp.lt.s32.totalorder %v440_v28, 16384  ;;  %v936_v47 = vsel %vm904_vm13, %v290_v31, 0.0  ;;  %v308_v50 = vld [vmem:[%s864_s22 + $0x28] sm:$0xff]  ;;  %vm949_vm3 = vmand %vm455_vm14, %vm471_vm15  ;;  %v293_v58 = vld [vmem:[%s857_s19 + $0x30] sm:$0xff] }
  0x17   : > { %v940_v48 = vsel %vm904_vm13, %v306_v32, 0.0  ;;  %v429_v51 = vadd.s32 13312, %v839_v2  ;;  %v430_v52 = vadd.s32 14336, %v839_v2  ;;  %v443_v53 = vadd.s32 %v841_v3, %v425_v26  ;;  %v309_v59 = vld [vmem:[%s864_s22 + $0x30] sm:$0xff]  ;;  %vm969_vm6 = vmand %vm456_vm1, %vm472_vm2  ;;  %v294_v4 = vld [vmem:[%s857_s19 + $0x38] sm:$0xff] }
  0x18   : > { %v533_v55 = vmul.f32 %v918_v39, %v916_v38  ;;  %vm457_vm4 = vcmp.ge.s32.totalorder %v441_v34, 4096  ;;  %vm473_vm5 = vcmp.lt.s32.totalorder %v441_v34, 16384  ;;  %v957_v56 = vsel %vm926_vm0, %v291_v40, 0.0  ;;  %v310_v5 = vld [vmem:[%s864_s22 + $0x38] sm:$0xff]  ;;  %v295_v13 = vld [vmem:[%s857_s19 + $0x40] sm:$0xff]  ;;  %v296_v21 = vld [vmem:[%s857_s19 + $0x48] sm:$0xff] }
  0x19   : > { %v961_v57 = vsel %vm926_vm0, %v307_v41, 0.0  ;;  %v431_v60 = vadd.s32 15360, %v839_v2  ;;  %v444_v61 = vadd.s32 %v841_v3, %v426_v27  ;;  %v534_v63 = vmul.f32 %v940_v48, %v936_v47  ;;  %vm989_vm9 = vmand %vm457_vm4, %vm473_vm5  ;;  %v311_v14 = vld [vmem:[%s864_s22 + $0x40] sm:$0xff]  ;;  %v312_v22 = vld [vmem:[%s864_s22 + $0x48] sm:$0xff] }
  0x1a   : > { %v547_v0 = vadd.f32 %v532_v46, %v531_v45  ;;  %vm458_vm7 = vcmp.ge.s32.totalorder %v442_v43, 4096  ;;  %vm474_vm8 = vcmp.lt.s32.totalorder %v442_v43, 16384  ;;  %v977_v1 = vsel %vm949_vm3, %v292_v49, 0.0  ;;  %v297_v32 = vld [vmem:[%s857_s19 + $0x50] sm:$0xff]  ;;  %v316_v54 = vld [vmem:[%s864_s22 + $0x68] sm:$0xff]  ;;  %v302_v8 = vld [vmem:[%s857_s19 + $0x78] sm:$0xff] }
  0x1b   : > { %v981_v2 = vsel %vm949_vm3, %v308_v50, 0.0  ;;  %v445_v6 = vadd.s32 %v841_v3, %v427_v33  ;;  %v446_v7 = vadd.s32 %v841_v3, %v428_v42  ;;  %v535_v9 = vmul.f32 %v961_v57, %v957_v56  ;;  %vm490_vm12 = vmand %vm458_vm7, %vm474_vm8  ;;  %v313_v33 = vld [vmem:[%s864_s22 + $0x50] sm:$0xff] }
  0x1c   : > { %v548_v10 = vadd.f32 %v547_v0, %v533_v55  ;;  %vm459_vm10 = vcmp.ge.s32.totalorder %v443_v53, 4096  ;;  %vm475_vm11 = vcmp.lt.s32.totalorder %v443_v53, 16384  ;;  %v997_v11 = vsel %vm969_vm6, %v293_v58, 0.0 }
  0x1d   : > { %v1001_v12 = vsel %vm969_vm6, %v309_v59, 0.0  ;;  %v447_v15 = vadd.s32 %v841_v3, %v429_v51  ;;  %v1007_v16 = vadd.s32 %v841_v3, %v430_v52  ;;  %v536_v17 = vmul.f32 %v981_v2, %v977_v1  ;;  %vm1025_vm1 = vmand %vm459_vm10, %vm475_vm11 }
  0x1e   : > { %v549_v18 = vadd.f32 %v548_v10, %v534_v63  ;;  %vm460_vm13 = vcmp.ge.s32.totalorder %v444_v61, 4096  ;;  %vm476_vm14 = vcmp.lt.s32.totalorder %v444_v61, 16384  ;;  %v1015_v19 = vsel %vm989_vm9, %v294_v4, 0.0  ;;  %v301_v63 = vld [vmem:[%s857_s19 + $0x70] sm:$0xff] }
  0x1f   : > { %v1019_v20 = vsel %vm989_vm9, %v310_v5, 0.0  ;;  %vm461_vm15 = vcmp.ge.s32.totalorder %v445_v6, 4096  ;;  %vm477_vm0 = vcmp.lt.s32.totalorder %v445_v6, 16384  ;;  %v537_v24 = vmul.f32 %v1001_v12, %v997_v11  ;;  %vm492_vm3 = vmand %vm460_vm13, %vm476_vm14 }
  0x20   : > { %v550_v25 = vadd.f32 %v549_v18, %v535_v9  ;;  %v1031_v26 = vsel %vm490_vm12, %v295_v13, 0.0  ;;  %v1033_v27 = vsel %vm490_vm12, %v311_v14, 0.0  ;;  %v565_v28 = vadd.f32 %v910_v36, %v892_v29  ;;  %v298_v36 = vld [vmem:[%s857_s19 + $0x58] sm:$0xff]  ;;  %vm493_vm7 = vmand %vm461_vm15, %vm477_vm0 }
  0x21   : > { %v566_v31 = vadd.f32 %v914_v37, %v896_v30  ;;  %v449_v34 = vadd.s32 %v841_v3, %v431_v60  ;;  %vm462_vm2 = vcmp.ge.s32.totalorder %v446_v7, 4096  ;;  %v538_v35 = vmul.f32 %v1019_v20, %v1015_v19  ;;  %v314_v37 = vld [vmem:[%s864_s22 + $0x58] sm:$0xff] }
  0x22   : > { %v551_v40 = vadd.f32 %v550_v25, %v536_v17  ;;  %vm478_vm4 = vcmp.lt.s32.totalorder %v446_v7, 16384  ;;  %v507_v29 = vsel %vm1025_vm1, %v296_v21, 0.0  ;;  %v523_v30 = vsel %vm1025_vm1, %v312_v22, 0.0  ;;  %v318_v9 = vld [vmem:[%s864_s22 + $0x78] sm:$0xff] }
  0x23   : > { %v567_v3 = vadd.f32 %v918_v39, %v916_v38  ;;  %vm463_vm5 = vcmp.ge.s32.totalorder %v447_v15, 4096  ;;  %vm479_vm6 = vcmp.lt.s32.totalorder %v447_v15, 16384  ;;  %v539_v41 = vmul.f32 %v1033_v27, %v1031_v26  ;;  %v299_v38 = vld [vmem:[%s857_s19 + $0x60] sm:$0xff]  ;;  %vm494_vm10 = vmand %vm462_vm2, %vm478_vm4 }
  0x24   : > { %v552_v42 = vadd.f32 %v551_v40, %v537_v24  ;;  %v508_v43 = vsel %vm492_vm3, %v297_v32, 0.0  ;;  %v524_v44 = vsel %vm492_vm3, %v313_v33, 0.0  ;;  %v568_v45 = vadd.f32 %v940_v48, %v936_v47  ;;  %v315_v39 = vld [vmem:[%s864_s22 + $0x60] sm:$0xff]  ;;  %v300_v48 = vld [vmem:[%s857_s19 + $0x68] sm:$0xff]  ;;  %vm495_vm13 = vmand %vm463_vm5, %vm479_vm6 }
  0x25   : > { %v581_v46 = vadd.f32 %v566_v31, %v565_v28  ;;  %vm464_vm8 = vcmp.ge.s32.totalorder %v1007_v16, 4096  ;;  %vm480_vm9 = vcmp.lt.s32.totalorder %v1007_v16, 16384  ;;  %v540_v49 = vmul.f32 %v523_v30, %v507_v29 }
  0x26   : > { %v553_v50 = vadd.f32 %v552_v42, %v538_v35  ;;  %v509_v51 = vsel %vm493_vm7, %v298_v36, 0.0  ;;  %v525_v52 = vsel %vm493_vm7, %v314_v37, 0.0  ;;  %v569_v53 = vadd.f32 %v961_v57, %v957_v56  ;;  %v317_v56 = vld [vmem:[%s864_s22 + $0x70] sm:$0xff]  ;;  %vm496_vm14 = vmand %vm464_vm8, %vm480_vm9 }
  0x27   : > { %v582_v47 = vadd.f32 %v581_v46, %v567_v3  ;;  %vm465_vm11 = vcmp.ge.s32.totalorder %v449_v34, 4096  ;;  %vm481_vm12 = vcmp.lt.s32.totalorder %v449_v34, 16384  ;;  %v541_v55 = vmul.f32 %v524_v44, %v508_v43 }
  0x28   : > { %v554_v58 = vadd.f32 %v553_v50, %v539_v41  ;;  %v510_v59 = vsel %vm494_vm10, %v299_v38, 0.0  ;;  %v526_v60 = vsel %vm494_vm10, %v315_v39, 0.0  ;;  %v570_v61 = vadd.f32 %v981_v2, %v977_v1  ;;  %vm497_vm15 = vmand %vm465_vm11, %vm481_vm12 }
  0x29   : > { %v583_v62 = vadd.f32 %v582_v47, %v568_v45  ;;  %v542_v57 = vmul.f32 %v525_v52, %v509_v51  ;;  %v511_v4 = vsel %vm495_vm13, %v300_v48, 0.0  ;;  %v527_v5 = vsel %vm495_vm13, %v316_v54, 0.0 }
  0x2a   : > { %v555_v0 = vadd.f32 %v554_v58, %v540_v49  ;;  %v571_v6 = vadd.f32 %v1001_v12, %v997_v11  ;;  %v543_v1 = vmul.f32 %v526_v60, %v510_v59  ;;  %v512_v10 = vsel %vm496_vm14, %v301_v63, 0.0 }
  0x2b   : > { %v584_v7 = vadd.f32 %v583_v62, %v569_v53  ;;  %v528_v13 = vsel %vm496_vm14, %v317_v56, 0.0  ;;  %v572_v14 = vadd.f32 %v1019_v20, %v1015_v19  ;;  %v544_v16 = vmul.f32 %v527_v5, %v511_v4 }
  0x2c   : > { %v556_v2 = vadd.f32 %v555_v0, %v541_v55  ;;  %v513_v18 = vsel %vm497_vm15, %v302_v8, 0.0  ;;  %v529_v21 = vsel %vm497_vm15, %v318_v9, 0.0  ;;  %v573_v11 = vadd.f32 %v1033_v27, %v1031_v26 }
  0x2d   : > { %v585_v15 = vadd.f32 %v584_v7, %v570_v61  ;;  %v545_v22 = vmul.f32 %v528_v13, %v512_v10  ;;  %v574_v24 = vadd.f32 %v523_v30, %v507_v29  ;;  %v546_v28 = vmul.f32 %v529_v21, %v513_v18 }
  0x2e   : > { %v557_v17 = vadd.f32 %v556_v2, %v542_v57  ;;  %v575_v32 = vadd.f32 %v524_v44, %v508_v43  ;;  %v576_v20 = vadd.f32 %v525_v52, %v509_v51  ;;  %v577_v40 = vadd.f32 %v526_v60, %v510_v59 }
  0x2f   : > { %v586_v12 = vadd.f32 %v585_v15, %v571_v6  ;;  %v578_v27 = vadd.f32 %v527_v5, %v511_v4  ;;  %v579_v29 = vadd.f32 %v528_v13, %v512_v10  ;;  %v580_v36 = vadd.f32 %v529_v21, %v513_v18 }
  0x30   : > { %v558_v23 = vadd.f32 %v557_v17, %v543_v1 }
  0x31   : > { %v587_v25 = vadd.f32 %v586_v12, %v572_v14 }
  0x32   : > { %v559_v31 = vadd.f32 %v558_v23, %v544_v16 }
  0x33   : > { %v588_v33 = vadd.f32 %v587_v25, %v573_v11 }
  0x34   : > { %v560_v19 = vadd.f32 %v559_v31, %v545_v22 }
  0x35   : > { %v589_v34 = vadd.f32 %v588_v33, %v574_v24 }
  0x36   : > { %v561_v35 = vadd.f32 %v560_v19, %v546_v28 }
  0x37   : > { %v590_v26 = vadd.f32 %v589_v34, %v575_v32 }
  0x38   : > { %563 = vst [vmem:[%s273_s26] sm:$0xff] %v561_v35 }
  0x39   : > { %v591_v3 = vadd.f32 %v590_v26, %v576_v20 }
  0x3b   : > { %v592_v30 = vadd.f32 %v591_v3, %v577_v40 }
  0x3d   : > { %v593_v37 = vadd.f32 %v592_v30, %v578_v27 }
  0x3f   : > { %v594_v41 = vadd.f32 %v593_v37, %v579_v29 }
  0x41   : > { %v595_v42 = vadd.f32 %v594_v41, %v580_v36 }
  0x43   : > { %597 = vst [vmem:[%s280_s29] sm:$0xff] %v595_v42 }
  0x44 PF: > { %s14_s14 = sadd.s32 1, %s799_s14   ;;  %s1126_s12 = smov %s795_s13 }
  0x45   : > { %p11_p5 = scmp.ge.s32.totalorder %s14_s14, 4   ;;  %s1127_s13 = smov %s1129_s15 }
  0x47   :  { %13 = sbr.rel (!%p11_p5) target bundleno = 2 (0x2), region = 85 }

</bundles_post_ra>
